<compile_context>
chip_gen: v7x
topology: tpu7x:2x2x1
jax: 0.10.0
libtpu: 0.0.40
codegen_flags: <defaults>
</compile_context>

<pallas_src>
import functools

import jax
import jax.numpy as jnp
from jax.experimental import pallas as pl
from jax.experimental.pallas import tpu as pltpu

MAX_NORM = 1.0      # nn.Embedding(max_norm=1, norm_type=2)
RENORM_EPS = 1e-7   # matches torch.embedding_renorm_


def _transe_kernel(lhs_ref, rel_ref, rhs_ref, out_ref, *, p):
    """One batch tile in lane-major layout.

    lhs_ref/rel_ref/rhs_ref: (D, TB) float32 — embed dim on sublanes,
                             batch on lanes.
    out_ref:                 (1, TB) float32 — lane-dense energies.
    """

    def renorm(x):
        # L2 norm per batch element (per lane); rescale where norm > MAX_NORM.
        sq = jnp.sum(x * x, axis=0, keepdims=True)            # (1, TB)
        n = jnp.sqrt(sq)
        scale = jnp.where(n > MAX_NORM, MAX_NORM / (n + RENORM_EPS), 1.0)
        return x * scale

    lhs = renorm(lhs_ref[...])
    rel = renorm(rel_ref[...])
    rhs = renorm(rhs_ref[...])

    d = lhs + rel - rhs                                        # (D, TB)

    # torch.norm(p=p, dim=1): (sum |d|^p)^(1/p), reduced over the embed dim
    # (sublane axis here). p is a static Python float -> branch at trace time.
    if p == 2.0:
        s = jnp.sum(d * d, axis=0, keepdims=True)              # (1, TB)
        out_ref[...] = jnp.sqrt(s)
    elif p == 1.0:
        out_ref[...] = jnp.sum(jnp.abs(d), axis=0, keepdims=True)
    else:
        s = jnp.sum(jnp.abs(d) ** p, axis=0, keepdims=True)
        out_ref[...] = s ** (1.0 / p)


def transe_forward(triplets, ent_embeds, rel_embeds, *, p=2.0, tile_b=512):
    """triplets: (B, 3) int32 [lhs, rel, rhs]; returns (B,) float32 energies."""
    # Embedding gather in plain JAX (glue).
    lhs = jnp.take(ent_embeds, triplets[:, 0], axis=0)         # (B, D)
    rel = jnp.take(rel_embeds, triplets[:, 1], axis=0)
    rhs = jnp.take(ent_embeds, triplets[:, 2], axis=0)

    B, D = lhs.shape

    # Batch tile: multiple of 128 lanes, clamped by a conservative VMEM budget
    # (3 inputs x 2 pipeline buffers x D x tile_b x 4B <= ~12 MiB works for the
    # smallest scoped-VMEM defaults across v5e/v6e/v7x), and not far past B.
    vmem_budget_bytes = 12 * 1024 * 1024
    max_tile_by_vmem = max(128, vmem_budget_bytes // (3 * 2 * D * 4))
    tile_b = max(128, min(int(tile_b), max_tile_by_vmem))
    tile_b = (tile_b // 128) * 128
    tile_b = min(tile_b, max(128, pl.cdiv(B, 128) * 128))

    b_pad = pl.cdiv(B, tile_b) * tile_b

    def to_lane_major(x):
        # (B, D) -> (D, B): batch on the 128-lane axis, embed dim on sublanes.
        xt = x.T
        if b_pad != B:
            xt = jnp.pad(xt, ((0, 0), (0, b_pad - B)))
        return xt

    lhs_t = to_lane_major(lhs)
    rel_t = to_lane_major(rel)
    rhs_t = to_lane_major(rhs)

    out = pl.pallas_call(
        functools.partial(_transe_kernel, p=float(p)),
        out_shape=jax.ShapeDtypeStruct((1, b_pad), jnp.float32),
        grid=(b_pad // tile_b,),
        in_specs=[
            pl.BlockSpec((D, tile_b), lambda i: (0, i)),
            pl.BlockSpec((D, tile_b), lambda i: (0, i)),
            pl.BlockSpec((D, tile_b), lambda i: (0, i)),
        ],
        out_specs=pl.BlockSpec((1, tile_b), lambda i: (0, i)),
        compiler_params=pltpu.CompilerParams(
            dimension_semantics=("parallel",)),
    )(lhs_t, rel_t, rhs_t)
    return out[0, :B]


def _reference_forward(triplets, ent_embeds, rel_embeds, p=2.0):
    """Pure-JAX reference (same math, no Pallas)."""
    def renorm(x):
        n = jnp.sqrt(jnp.sum(x * x, axis=1, keepdims=True))
        scale = jnp.where(n > MAX_NORM, MAX_NORM / (n + RENORM_EPS), 1.0)
        return x * scale

    lhs = renorm(jnp.take(ent_embeds, triplets[:, 0], axis=0))
    rel = renorm(jnp.take(rel_embeds, triplets[:, 1], axis=0))
    rhs = renorm(jnp.take(ent_embeds, triplets[:, 2], axis=0))
    d = lhs + rel - rhs
    return jnp.sum(jnp.abs(d) ** p, axis=1) ** (1.0 / p)


if __name__ == "__main__":
    num_ent, num_rel, embed_dim = 100, 20, 32
    batch = 8

    key = jax.random.PRNGKey(0)
    k_ent, k_rel, k_l, k_r, k_t = jax.random.split(key, 5)

    # Deterministic parameter init: uniform(-r, r), r = 6 / sqrt(embed_dim)
    r = 6.0 / jnp.sqrt(jnp.float32(embed_dim))
    ent_embeds = jax.random.uniform(
        k_ent, (num_ent, embed_dim), jnp.float32, minval=-r, maxval=r)
    rel_embeds = jax.random.uniform(
        k_rel, (num_rel, embed_dim), jnp.float32, minval=-r, maxval=r)

    # Deterministic example triplets: (batch, 3) = [lhs_idx, rel_idx, rhs_idx]
    lhs_idx = jax.random.randint(k_l, (batch,), 0, num_ent, dtype=jnp.int32)
    rel_idx = jax.random.randint(k_r, (batch,), 0, num_rel, dtype=jnp.int32)
    rhs_idx = jax.random.randint(k_t, (batch,), 0, num_ent, dtype=jnp.int32)
    triplets = jnp.stack([lhs_idx, rel_idx, rhs_idx], axis=1)

    # p = 2 (fast path: d*d + sqrt)
    energies = transe_forward(triplets, ent_embeds, rel_embeds, p=2.0)
    energies = jax.block_until_ready(energies)
    ref = _reference_forward(triplets, ent_embeds, rel_embeds, p=2.0)
    assert energies.shape == (batch,)
    assert jnp.allclose(energies, ref, atol=1e-5, rtol=1e-5)

    # p = 1 (fast path: |d| sum)
    energies_l1 = transe_forward(triplets, ent_embeds, rel_embeds, p=1.0)
    energies_l1 = jax.block_until_ready(energies_l1)
    ref_l1 = _reference_forward(triplets, ent_embeds, rel_embeds, p=1.0)
    assert jnp.allclose(energies_l1, ref_l1, atol=1e-5, rtol=1e-5)

    print("KERNEL_OK")
</pallas_src>

<mosaic_0001>
module attributes {stable_mosaic.version = 11 : i64} {
  func.func @_transe_kernel(%arg0: i32, %arg1: memref<32x128xf32, #tpu.memory_space<vmem>>, %arg2: memref<32x128xf32, #tpu.memory_space<vmem>>, %arg3: memref<32x128xf32, #tpu.memory_space<vmem>>, %arg4: memref<1x128xf32, #tpu.memory_space<vmem>>) attributes {dimension_semantics = [#tpu.dimension_semantics<parallel>], iteration_bounds = array<i64: 1>, scalar_prefetch = 0 : i64, scratch_operands = 0 : i64, tpu.core_type = #tpu.core_type<tc>, window_params = [{transform_indices = @transform_0, window_bounds = array<i64: 32, 128>}, {transform_indices = @transform_1, window_bounds = array<i64: 32, 128>}, {transform_indices = @transform_2, window_bounds = array<i64: 32, 128>}, {transform_indices = @transform_3, window_bounds = array<i64: 1, 128>}]} {
    %c0 = arith.constant 0 : index
    %c0_0 = arith.constant 0 : index
    %0 = vector.load %arg1[%c0, %c0_0] : memref<32x128xf32, #tpu.memory_space<vmem>>, vector<32x128xf32>
    %1 = arith.mulf %0, %0 : vector<32x128xf32>
    %cst = arith.constant dense<0.000000e+00> : vector<128xf32>
    %2 = vector.multi_reduction <add>, %1, %cst [0] : vector<32x128xf32> to vector<128xf32>
    %3 = vector.shape_cast %2 : vector<128xf32> to vector<1x128xf32>
    %4 = math.sqrt %3 : vector<1x128xf32>
    %cst_1 = arith.constant 1.000000e+00 : f32
    %5 = vector.broadcast %cst_1 : f32 to vector<1x128xf32>
    %6 = arith.cmpf ogt, %4, %5 : vector<1x128xf32>
    %cst_2 = arith.constant 1.000000e-07 : f32
    %7 = vector.broadcast %cst_2 : f32 to vector<1x128xf32>
    %8 = arith.addf %4, %7 : vector<1x128xf32>
    %cst_3 = arith.constant 1.000000e+00 : f32
    %9 = vector.broadcast %cst_3 : f32 to vector<1x128xf32>
    %10 = arith.divf %9, %8 : vector<1x128xf32>
    %cst_4 = arith.constant 1.000000e+00 : f32
    %11 = vector.broadcast %cst_4 : f32 to vector<1x128xf32>
    %12 = arith.select %6, %10, %11 : vector<1x128xi1>, vector<1x128xf32>
    %13 = vector.broadcast %12 : vector<1x128xf32> to vector<32x128xf32>
    %14 = arith.mulf %0, %13 : vector<32x128xf32>
    %c0_5 = arith.constant 0 : index
    %c0_6 = arith.constant 0 : index
    %15 = vector.load %arg2[%c0_5, %c0_6] : memref<32x128xf32, #tpu.memory_space<vmem>>, vector<32x128xf32>
    %16 = arith.mulf %15, %15 : vector<32x128xf32>
    %cst_7 = arith.constant dense<0.000000e+00> : vector<128xf32>
    %17 = vector.multi_reduction <add>, %16, %cst_7 [0] : vector<32x128xf32> to vector<128xf32>
    %18 = vector.shape_cast %17 : vector<128xf32> to vector<1x128xf32>
    %19 = math.sqrt %18 : vector<1x128xf32>
    %cst_8 = arith.constant 1.000000e+00 : f32
    %20 = vector.broadcast %cst_8 : f32 to vector<1x128xf32>
    %21 = arith.cmpf ogt, %19, %20 : vector<1x128xf32>
    %cst_9 = arith.constant 1.000000e-07 : f32
    %22 = vector.broadcast %cst_9 : f32 to vector<1x128xf32>
    %23 = arith.addf %19, %22 : vector<1x128xf32>
    %cst_10 = arith.constant 1.000000e+00 : f32
    %24 = vector.broadcast %cst_10 : f32 to vector<1x128xf32>
    %25 = arith.divf %24, %23 : vector<1x128xf32>
    %cst_11 = arith.constant 1.000000e+00 : f32
    %26 = vector.broadcast %cst_11 : f32 to vector<1x128xf32>
    %27 = arith.select %21, %25, %26 : vector<1x128xi1>, vector<1x128xf32>
    %28 = vector.broadcast %27 : vector<1x128xf32> to vector<32x128xf32>
    %29 = arith.mulf %15, %28 : vector<32x128xf32>
    %c0_12 = arith.constant 0 : index
    %c0_13 = arith.constant 0 : index
    %30 = vector.load %arg3[%c0_12, %c0_13] : memref<32x128xf32, #tpu.memory_space<vmem>>, vector<32x128xf32>
    %31 = arith.mulf %30, %30 : vector<32x128xf32>
    %cst_14 = arith.constant dense<0.000000e+00> : vector<128xf32>
    %32 = vector.multi_reduction <add>, %31, %cst_14 [0] : vector<32x128xf32> to vector<128xf32>
    %33 = vector.shape_cast %32 : vector<128xf32> to vector<1x128xf32>
    %34 = math.sqrt %33 : vector<1x128xf32>
    %cst_15 = arith.constant 1.000000e+00 : f32
    %35 = vector.broadcast %cst_15 : f32 to vector<1x128xf32>
    %36 = arith.cmpf ogt, %34, %35 : vector<1x128xf32>
    %cst_16 = arith.constant 1.000000e-07 : f32
    %37 = vector.broadcast %cst_16 : f32 to vector<1x128xf32>
    %38 = arith.addf %34, %37 : vector<1x128xf32>
    %cst_17 = arith.constant 1.000000e+00 : f32
    %39 = vector.broadcast %cst_17 : f32 to vector<1x128xf32>
    %40 = arith.divf %39, %38 : vector<1x128xf32>
    %cst_18 = arith.constant 1.000000e+00 : f32
    %41 = vector.broadcast %cst_18 : f32 to vector<1x128xf32>
    %42 = arith.select %36, %40, %41 : vector<1x128xi1>, vector<1x128xf32>
    %43 = vector.broadcast %42 : vector<1x128xf32> to vector<32x128xf32>
    %44 = arith.mulf %30, %43 : vector<32x128xf32>
    %45 = arith.addf %14, %29 : vector<32x128xf32>
    %46 = arith.subf %45, %44 : vector<32x128xf32>
    %47 = arith.mulf %46, %46 : vector<32x128xf32>
    %cst_19 = arith.constant dense<0.000000e+00> : vector<128xf32>
    %48 = vector.multi_reduction <add>, %47, %cst_19 [0] : vector<32x128xf32> to vector<128xf32>
    %49 = vector.shape_cast %48 : vector<128xf32> to vector<1x128xf32>
    %50 = math.sqrt %49 : vector<1x128xf32>
    %c0_20 = arith.constant 0 : index
    %c0_21 = arith.constant 0 : index
    %51 = vector.load %arg4[%c0_20, %c0_21] : memref<1x128xf32, #tpu.memory_space<vmem>>, vector<1x128xf32>
    tpu.vector_store %arg4[%c0_20, %c0_21], %50 {strides = array<i32>} : memref<1x128xf32, #tpu.memory_space<vmem>>, vector<1x128xf32>,
    return
  }
  func.func @transform_0(%arg0: i32) -> (i32, i32) {
    %c0_i32 = arith.constant 0 : i32
    %c0_i32_0 = arith.constant 0 : i32
    return %c0_i32, %arg0 : i32, i32
  }
  func.func @transform_1(%arg0: i32) -> (i32, i32) {
    %c0_i32 = arith.constant 0 : i32
    %c0_i32_0 = arith.constant 0 : i32
    return %c0_i32, %arg0 : i32, i32
  }
  func.func @transform_2(%arg0: i32) -> (i32, i32) {
    %c0_i32 = arith.constant 0 : i32
    %c0_i32_0 = arith.constant 0 : i32
    return %c0_i32, %arg0 : i32, i32
  }
  func.func @transform_3(%arg0: i32) -> (i32, i32) {
    %c0_i32 = arith.constant 0 : i32
    %c0_i32_0 = arith.constant 0 : i32
    return %c0_i32, %arg0 : i32, i32
  }
}

</mosaic_0001>

<bundles_post_ra>
// kernel: tpu_custom_call.1
= control target key start
LH: loop header
LB: loop body
LE: loop exit
PB: predicated region body
PF: predicated region fallthrough
CT: control target
= control target key end

     0   :  { %8 = vsyncpa [#allocation3], 0  ;;  %s464_s0 = inlined_call_operand.hbm [shape: f32[32,128], index: 0, kind: input, shape index: {}]   ;;  %s465_s1 = inlined_call_operand.hbm [shape: f32[32,128], index: 1, kind: input, shape index: {}]   ;;  %s466_s2 = inlined_call_operand.hbm [shape: f32[32,128], index: 2, kind: input, shape index: {}]   ;;  %s467_s3 = inlined_call_operand.hbm [shape: f32[1,128], index: 3, kind: output, shape index: {}]  }
   0x1   :  { %9 = vsyncpa [#allocation6], 0 }
   0x2   :  { %10 = vsyncpa [#allocation4], 0  ;;  %s314_s12 = smov [#allocation5]   ;;  %s315_s14 = smov [#allocation2]  }
   0x3   :  { %s28_s13 = sshll.u32 %s314_s12, 4  ;;  %s16_s15 = sshll.u32 %s315_s14, 4  ;;  %s29_s13 = int_to_ptr.vmem [resolvable:$true] %s28_s13  ;;  %s340_s15 = int_to_ptr.vmem [resolvable:$true] %s16_s15 }
   0x4   :  { %s220_s18 = scalar_lea.hbm %s465_s1, 512 }
   0x5   :  { %p221_p0 = scmp.ne.s32.totalorder %s465_s1, %s220_s18  ;;  %p224_p1 = scmp.lt.u32.totalorder %s220_s18, %s465_s1 }
   0x7   :  { %p226_p2 = pnand %p224_p1, %p221_p0 }
   0x9   :  { %229 = shalt.err (!%p226_p2)
}
   0xa   :  { %s230_s23 = scalar_lea.vmem %s29_s13, 512  ;;  %p235_p4 = scmp.lt.s32.totalorder %s29_s13, %s29_s13 }
   0xb   :  { %p231_p3 = scmp.ne.s32.totalorder %s29_s13, %s230_s23  ;;  %p236_p5 = scmp.lt.s32.totalorder %s230_s23, %s230_s23 }
   0xd   :  { %p237_p6 = por %p236_p5, %p235_p4 }
   0xf   :  { %p238_p7 = pnand %p237_p6, %p231_p3 }
  0x11   :  { %241 = shalt.err (!%p238_p7)
}
  0x12   :  { %s316_s24 = smov 128   ;;  %s317_s25 = smov 8  }
  0x13   :  { %34 = dma.hbm_to_vmem [thread:$0]  %s465_s1, 512, %s29_s13, [#allocation6], %s316_s24, %s316_s24, %s317_s25  }
  0x14   :  { %s242_s30 = scalar_lea.hbm %s464_s0, 512 }
  0x15   :  { %p243_p8 = scmp.ne.s32.totalorder %s464_s0, %s242_s30  ;;  %p246_p9 = scmp.lt.u32.totalorder %s242_s30, %s464_s0 }
  0x17   :  { %p248_p10 = pnand %p246_p9, %p243_p8 }
  0x19   :  { %251 = shalt.err (!%p248_p10)
}
  0x1a   :  { %s252_s8 = scalar_lea.vmem %s340_s15, 512  ;;  %p257_p12 = scmp.lt.s32.totalorder %s340_s15, %s340_s15 }
  0x1b   :  { %p253_p11 = scmp.ne.s32.totalorder %s340_s15, %s252_s8  ;;  %p258_p13 = scmp.lt.s32.totalorder %s252_s8, %s252_s8 }
  0x1d   :  { %p259_p0 = por %p258_p13, %p257_p12 }
  0x1f   :  { %p260_p1 = pnand %p259_p0, %p253_p11 }
  0x21   :  { %263 = shalt.err (!%p260_p1)
}
  0x22   :  { %22 = dma.hbm_to_vmem [thread:$0]  %s464_s0, 512, %s340_s15, [#allocation3], %s316_s24, %s316_s24, %s317_s25  }
  0x23   :  { %s318_s10 = smov [#allocation7]   ;;  %s264_s14 = scalar_lea.hbm %s466_s2, 512 }
  0x24   :  { %s40_s11 = sshll.u32 %s318_s10, 4  ;;  %p265_p2 = scmp.ne.s32.totalorder %s466_s2, %s264_s14  ;;  %s41_s11 = int_to_ptr.vmem [resolvable:$true] %s40_s11 }
  0x25   :  { %p268_p3 = scmp.lt.u32.totalorder %s264_s14, %s466_s2 }
  0x27   :  { %p270_p4 = pnand %p268_p3, %p265_p2 }
  0x29   :  { %273 = shalt.err (!%p270_p4)
}
  0x2a   :  { %s274_s20 = scalar_lea.vmem %s41_s11, 512  ;;  %p279_p6 = scmp.lt.s32.totalorder %s41_s11, %s41_s11 }
  0x2b   :  { %p275_p5 = scmp.ne.s32.totalorder %s41_s11, %s274_s20  ;;  %p280_p7 = scmp.lt.s32.totalorder %s274_s20, %s274_s20 }
  0x2d   :  { %p281_p8 = por %p280_p7, %p279_p6 }
  0x2f   :  { %p282_p9 = pnand %p281_p8, %p275_p5 }
  0x31   :  { %285 = shalt.err (!%p282_p9)
}
  0x32   :  { %46 = dma.hbm_to_vmem [thread:$0]  %s466_s2, 512, %s41_s11, [#allocation6], %s316_s24, %s316_s24, %s317_s25  }
  0x33   :  { %308 = dma.done.wait [#allocation3], 512  }
  0x34   :  { %309 = vsyncadd [#allocation3], 4294966784 }
  0x35   :  { %310 = dma.done.wait [#allocation6], 1024  }
  0x36   :  { %311 = vsyncadd [#allocation6], 4294966272  ;;  %v392_v0 = vld [vmem:[#allocation2] sm:$0xff]  ;;  %v394_v1 = vld [vmem:[#allocation2 + $0x8] sm:$0xff]  ;;  %s319_s2 = smov [#allocation8]  }
  0x37   :  { %v396_v2 = vld [vmem:[#allocation2 + $0x10] sm:$0xff]  ;;  %v398_v3 = vld [vmem:[#allocation2 + $0x18] sm:$0xff]  ;;  %v60_v4 = vmul.f32 %v392_v0, %v392_v0  ;;  %v61_v5 = vmul.f32 %v394_v1, %v394_v1  ;;  %v406_v7 = vld [vmem:[#allocation5] sm:$0xff]  ;;  %s190_s21 = sshll.u32 %s319_s2, 4  ;;  %s191_s21 = int_to_ptr.vmem [resolvable:$true] %s190_s21 }
  0x38   :  { %v62_v6 = vmul.f32 %v396_v2, %v396_v2  ;;  %v408_v8 = vld [vmem:[#allocation5 + $0x8] sm:$0xff]  ;;  %v410_v9 = vld [vmem:[#allocation5 + $0x10] sm:$0xff]  ;;  %v412_v10 = vld [vmem:[#allocation5 + $0x18] sm:$0xff]  ;;  %v93_v11 = vmul.f32 %v406_v7, %v406_v7  ;;  %v63_v14 = vmul.f32 %v398_v3, %v398_v3  ;;  %s286_s22 = scalar_lea.vmem %s191_s21, 16  ;;  %s290_s23 = scalar_lea.vmem %s191_s21, 32 }
  0x39   :  { %v94_v12 = vmul.f32 %v408_v8, %v408_v8  ;;  %v418_v13 = vld [vmem:[#allocation7] sm:$0xff]  ;;  %v64_v15 = vadd.f32 %v61_v5, %v60_v4  ;;  %v95_v16 = vmul.f32 %v410_v9, %v410_v9  ;;  %v424_v17 = vld [vmem:[#allocation7 + $0x8] sm:$0xff]  ;;  %v426_v18 = vld [vmem:[#allocation7 + $0x10] sm:$0xff]  ;;  %v96_v21 = vmul.f32 %v412_v10, %v412_v10  ;;  %p287_p10 = scmp.ne.s32.totalorder %s191_s21, %s286_s22  ;;  %p291_p11 = scmp.lt.s32.totalorder %s191_s21, %s191_s21 }
  0x3a   :  { %v428_v19 = vld [vmem:[#allocation7 + $0x18] sm:$0xff]  ;;  %v126_v20 = vmul.f32 %v418_v13, %v418_v13  ;;  %v127_v23 = vmul.f32 %v424_v17, %v424_v17  ;;  %v128_v24 = vmul.f32 %v426_v18, %v426_v18  ;;  %p292_p12 = scmp.lt.s32.totalorder %s290_s23, %s286_s22 }
  0x3b   :  { %v97_v22 = vadd.f32 %v94_v12, %v93_v11  ;;  %v65_v25 = vadd.f32 %v64_v15, %v62_v6  ;;  %v129_v27 = vmul.f32 %v428_v19, %v428_v19 }
  0x3c   :  { %v130_v28 = vadd.f32 %v127_v23, %v126_v20  ;;  %p293_p13 = por %p292_p12, %p291_p11 }
  0x3d   :  { %v98_v26 = vadd.f32 %v97_v22, %v95_v16  ;;  %v66_v29 = vadd.f32 %v65_v25, %v63_v14 }
  0x3e   :  { %v131_v31 = vadd.f32 %v130_v28, %v128_v24  ;;  %p294_p0 = pnand %p293_p13, %p287_p10 }
  0x3f   :  { %v99_v30 = vadd.f32 %v98_v26, %v96_v21  ;;  %v67_v32 = vrot.slane %v66_v29, 4 }
  0x40   :  { %v132_v34 = vadd.f32 %v131_v31, %v129_v27 }
  0x41   :  { %v100_v33 = vrot.slane %v99_v30, 4  ;;  %v68_v35 = vadd.f32 %v67_v32, %v66_v29 }
  0x42   :  { %v133_v37 = vrot.slane %v132_v34, 4 }
  0x43   :  { %v101_v36 = vadd.f32 %v100_v33, %v99_v30  ;;  %v69_v38 = vrot.slane %v68_v35, 2 }
  0x44   :  { %v134_v40 = vadd.f32 %v133_v37, %v132_v34 }
  0x45   :  { %v102_v39 = vrot.slane %v101_v36, 2  ;;  %v70_v41 = vadd.f32 %v69_v38, %v68_v35 }
  0x46   :  { %v135_v43 = vrot.slane %v134_v40, 2 }
  0x47   :  { %v103_v42 = vadd.f32 %v102_v39, %v101_v36  ;;  %v71_v44 = vrot.slane %v70_v41, 1 }
  0x48   :  { %v136_v46 = vadd.f32 %v135_v43, %v134_v40 }
  0x49   :  { %v104_v45 = vrot.slane %v103_v42, 1  ;;  %v72_v47 = vadd.f32 %v71_v44, %v70_v41 }
  0x4a   :  { %v137_v49 = vrot.slane %v136_v46, 1 }
  0x4b   :  { %v105_v48 = vadd.f32 %v104_v45, %v103_v42  ;;  %206 = vrsqrt.f32 %v72_v47  ;;  %vm75_vm0 = vcmp.eq.f32.partialorder %v72_v47, inf  ;;  %v78_v52 = vand.u32 2147483648, %v72_v47 }
  0x4c   :  { %v138_v50 = vadd.f32 %v137_v49, %v136_v46  ;;  %vm77_vm1 = vcmp.eq.f32.partialorder %v72_v47, 0.0 }
  0x4d   :  { %208 = vrsqrt.f32 %v105_v48  ;;  %vm108_vm2 = vcmp.eq.f32.partialorder %v105_v48, inf  ;;  %v111_v55 = vand.u32 2147483648, %v105_v48  ;;  %vm110_vm3 = vcmp.eq.f32.partialorder %v105_v48, 0.0 }
  0x4e   :  { %210 = vrsqrt.f32 %v138_v50  ;;  %vm141_vm4 = vcmp.eq.f32.partialorder %v138_v50, inf  ;;  %v144_v61 = vand.u32 2147483648, %v138_v50  ;;  %vm143_vm5 = vcmp.eq.f32.partialorder %v138_v50, 0.0 }
  0x55   :  { %v207_v51 = vpop.eup %206 }
  0x56   :  { %v74_v54 = vmul.f32 %v207_v51, %v72_v47 }
  0x57   :  { %v209_v53 = vpop.eup %208 }
  0x58   :  { %v107_v56 = vmul.f32 %v209_v53, %v105_v48  ;;  %v76_v57 = vsel %vm75_vm0, %v72_v47, %v74_v54  ;;  %v211_v58 = vpop.eup %210 }
  0x59   :  { %v79_v59 = vsel %vm77_vm1, %v78_v52, %v76_v57  ;;  %v140_v4 = vmul.f32 %v211_v58, %v138_v50 }
  0x5a   :  { %v109_v60 = vsel %vm108_vm2, %v105_v48, %v107_v56  ;;  %v81_v62 = vadd.f32 1e-07, %v79_v59  ;;  %vm80_vm6 = vcmp.gt.f32.partialorder %v79_v59, 1.0 }
  0x5b   :  { %v112_v63 = vsel %vm110_vm3, %v111_v55, %v109_v60  ;;  %v142_v6 = vsel %vm141_vm4, %v138_v50, %v140_v4 }
  0x5c   :  { %v114_v5 = vadd.f32 1e-07, %v112_v63  ;;  %212 = vrcp.f32 %v81_v62  ;;  %v145_v11 = vsel %vm143_vm5, %v144_v61, %v142_v6  ;;  %vm113_vm7 = vcmp.gt.f32.partialorder %v112_v63, 1.0 }
  0x5d   :  { %v147_v12 = vadd.f32 1e-07, %v145_v11  ;;  %vm146_vm8 = vcmp.gt.f32.partialorder %v145_v11, 1.0 }
  0x5e   :  { %214 = vrcp.f32 %v114_v5 }
  0x5f   :  { %216 = vrcp.f32 %v147_v12 }
  0x66   :  { %v213_v14 = vpop.eup %212 }
  0x67   :  { %v84_v16 = vsel %vm80_vm6, %v213_v14, 1.0 }
  0x68   :  { %v215_v15 = vpop.eup %214  ;;  %v85_v20 = vmul.f32 %v84_v16, %v392_v0  ;;  %v86_v21 = vmul.f32 %v84_v16, %v394_v1  ;;  %v87_v22 = vmul.f32 %v84_v16, %v396_v2  ;;  %v88_v23 = vmul.f32 %v84_v16, %v398_v3 }
  0x69   :  { %v117_v24 = vsel %vm113_vm7, %v215_v15, 1.0  ;;  %v217_v25 = vpop.eup %216 }
  0x6a   :  { %v118_v26 = vmul.f32 %v117_v24, %v406_v7  ;;  %v119_v27 = vmul.f32 %v117_v24, %v408_v8  ;;  %v120_v28 = vmul.f32 %v117_v24, %v410_v9  ;;  %v121_v29 = vmul.f32 %v117_v24, %v412_v10 }
  0x6b   :  { %v150_v30 = vsel %vm146_vm8, %v217_v25, 1.0 }
  0x6c   :  { %v151_v0 = vmul.f32 %v150_v30, %v418_v13  ;;  %v152_v31 = vmul.f32 %v150_v30, %v424_v17  ;;  %v153_v1 = vmul.f32 %v150_v30, %v426_v18  ;;  %v154_v2 = vmul.f32 %v150_v30, %v428_v19 }
  0x6d   :  { %v155_v3 = vadd.f32 %v118_v26, %v85_v20  ;;  %v156_v32 = vadd.f32 %v119_v27, %v86_v21  ;;  %v157_v33 = vadd.f32 %v120_v28, %v87_v22  ;;  %v158_v34 = vadd.f32 %v121_v29, %v88_v23 }
  0x6f   :  { %v159_v7 = vsub.f32 %v155_v3, %v151_v0  ;;  %v160_v35 = vsub.f32 %v156_v32, %v152_v31  ;;  %v161_v8 = vsub.f32 %v157_v33, %v153_v1  ;;  %v162_v36 = vsub.f32 %v158_v34, %v154_v2 }
  0x71   :  { %v163_v9 = vmul.f32 %v159_v7, %v159_v7  ;;  %v164_v37 = vmul.f32 %v160_v35, %v160_v35  ;;  %v165_v10 = vmul.f32 %v161_v8, %v161_v8  ;;  %v166_v38 = vmul.f32 %v162_v36, %v162_v36 }
  0x73   :  { %v167_v39 = vadd.f32 %v164_v37, %v163_v9 }
  0x75   :  { %v168_v13 = vadd.f32 %v167_v39, %v165_v10 }
  0x77   :  { %v169_v40 = vadd.f32 %v168_v13, %v166_v38 }
  0x79   :  { %v170_v17 = vrot.slane %v169_v40, 4 }
  0x7b   :  { %v171_v41 = vadd.f32 %v170_v17, %v169_v40 }
  0x7d   :  { %v172_v18 = vrot.slane %v171_v41, 2 }
  0x7f   :  { %v173_v42 = vadd.f32 %v172_v18, %v171_v41 }
  0x81   :  { %v174_v19 = vrot.slane %v173_v42, 1 }
  0x83   :  { %v175_v43 = vadd.f32 %v174_v19, %v173_v42 }
  0x85   :  { %218 = vrsqrt.f32 %v175_v43  ;;  %vm178_vm9 = vcmp.eq.f32.partialorder %v175_v43, inf  ;;  %v181_v45 = vand.u32 2147483648, %v175_v43  ;;  %vm180_vm10 = vcmp.eq.f32.partialorder %v175_v43, 0.0 }
  0x8f   :  { %v219_v44 = vpop.eup %218 }
  0x90   :  { %v177_v46 = vmul.f32 %v219_v44, %v175_v43 }
  0x92   :  { %v179_v47 = vsel %vm178_vm9, %v175_v43, %v177_v46 }
  0x93   :  { %v182_v48 = vsel %vm180_vm10, %v181_v45, %v179_v47 }
  0x94   :  { %183 = vst [vmem:[#allocation8] sm:$0x1] %v182_v48 }
  0x95   :  { %297 = shalt.err (!%p294_p0)
}
  0x96   :  { %s298_s26 = scalar_lea.hbm %s467_s3, 16 }
  0x97   :  { %p299_p1 = scmp.ne.s32.totalorder %s467_s3, %s298_s26  ;;  %p302_p2 = scmp.lt.u32.totalorder %s298_s26, %s467_s3 }
  0x99   :  { %p304_p3 = pnand %p302_p2, %p299_p1 }
  0x9b   :  { %307 = shalt.err (!%p304_p3)
}
  0x9c   :  { %193 = dma.vmem_to_hbm [thread:$0]  %s191_s21, 16, %s467_s3, [#allocation4]  }
  0x9d   :  { %312 = dma.done.wait [#allocation4], 16  }
  0x9e   :  { %313 = vsyncadd [#allocation4], 4294967280 }
  0x9f   :  { %197 = vsyncpa [#allocation3], 1 }
  0xa0   :  { %198 = vsyncpa [#allocation6], 1 }
  0xa1   :  { %199 = vsyncpa [#allocation4], 1 }

</bundles_post_ra>
